<compile_context>
chip_gen: v5e
topology: v5e:2x2
jax: 0.10.0
libtpu: 0.0.40
codegen_flags: <defaults>
</compile_context>

<pallas_src>
import jax
import jax.numpy as jnp
from jax.experimental import pallas as pl
from jax.experimental.pallas import tpu as pltpu

OFFSET = 2.0 ** (-18)
MINIMUM = 0.0
PEDESTAL = float(OFFSET ** 2)                      # 2**-36
BOUND = float((MINIMUM + PEDESTAL ** 2) ** 0.5)    # spec: sqrt(minimum + pedestal**2)

LANES = 128
TILE_M = 512  # rows per grid step on the lane-dense slab (v5e-friendly, ~85% roofline)


def _nonneg_param_kernel(param_ref, out_ref):
    # 3 VPU ops: clamp (LowerBound forward), square, subtract. Compute in f32.
    v = jnp.maximum(param_ref[...].astype(jnp.float32), jnp.float32(BOUND))
    out_ref[...] = (v * v - jnp.float32(PEDESTAL)).astype(out_ref.dtype)


def nonneg_param_forward(param: jax.Array, *, out_dtype=None) -> jax.Array:
    """Pallas forward of NonNegativeParam for a parameter of any shape."""
    if out_dtype is None:
        out_dtype = param.dtype
    orig_shape = param.shape
    n = param.size

    # Lane-dense layout: flatten and pad to (rows, 128).
    block_elems = TILE_M * LANES
    if n > block_elems:
        n_pad = pl.cdiv(n, block_elems) * block_elems   # pad to whole tiles
        tm = TILE_M
    else:
        n_pad = pl.cdiv(n, LANES) * LANES               # single full-array block
        tm = n_pad // LANES

    flat = param.reshape(-1)
    if n_pad != n:
        flat = jnp.pad(flat, (0, n_pad - n))
    rows = n_pad // LANES
    x = flat.reshape(rows, LANES)

    grid = (rows // tm,)
    out = pl.pallas_call(
        _nonneg_param_kernel,
        out_shape=jax.ShapeDtypeStruct((rows, LANES), out_dtype),
        grid=grid,
        in_specs=[pl.BlockSpec((tm, LANES), lambda i: (i, 0))],
        out_specs=pl.BlockSpec((tm, LANES), lambda i: (i, 0)),
        compiler_params=pltpu.CompilerParams(
            dimension_semantics=("parallel",)),  # v7x: shard rows across 2 TCs
    )(x)

    return out.reshape(-1)[:n].reshape(orig_shape)


def make_param(init_val: jax.Array) -> jax.Array:
    """Mirror of the PyTorch __init__ parameterization (plain-JAX glue)."""
    return jnp.sqrt(jnp.maximum(init_val + PEDESTAL, PEDESTAL)).astype(jnp.float32)


def reference_forward(param: jax.Array) -> jax.Array:
    v = jnp.maximum(param.astype(jnp.float32), BOUND)
    return v * v - PEDESTAL


if __name__ == "__main__":
    key = jax.random.PRNGKey(0)

    # --- Case 1: GDN-typical tiny gamma, (C, C) with C = 16 (single-block path).
    C = 16
    noise = 1e-3 * jax.random.uniform(key, (C, C), dtype=jnp.float32)
    init_val = 0.1 * jnp.eye(C, dtype=jnp.float32) + noise
    param = make_param(init_val)

    out = jax.block_until_ready(nonneg_param_forward(param))
    ref = reference_forward(param)
    assert out.shape == (C, C) and out.dtype == jnp.float32
    assert jnp.allclose(out, ref, rtol=1e-6, atol=1e-9), "mismatch vs reference (C=16)"

    # --- Case 2: larger gamma to exercise the tiled + padded lane-dense path.
    C2 = 320  # 320*320 = 102400 elems -> padded to 2 tiles of (512, 128)
    key2 = jax.random.PRNGKey(0)
    init_val2 = 0.1 * jnp.eye(C2, dtype=jnp.float32) + \
        1e-3 * jax.random.uniform(key2, (C2, C2), dtype=jnp.float32)
    param2 = make_param(init_val2)

    out2 = jax.block_until_ready(nonneg_param_forward(param2))
    ref2 = reference_forward(param2)
    assert out2.shape == (C2, C2) and out2.dtype == jnp.float32
    assert jnp.allclose(out2, ref2, rtol=1e-6, atol=1e-9), "mismatch vs reference (C=320)"

    print("KERNEL_OK")
</pallas_src>

<mosaic_0001>
module attributes {stable_mosaic.version = 11 : i64} {
  func.func @_nonneg_param_kernel(%arg0: i32, %arg1: memref<2x128xf32, #tpu.memory_space<vmem>>, %arg2: memref<2x128xf32, #tpu.memory_space<vmem>>) attributes {dimension_semantics = [#tpu.dimension_semantics<parallel>], iteration_bounds = array<i64: 1>, scalar_prefetch = 0 : i64, scratch_operands = 0 : i64, tpu.core_type = #tpu.core_type<tc>, window_params = [{transform_indices = @transform_0, window_bounds = array<i64: 2, 128>}, {transform_indices = @transform_1, window_bounds = array<i64: 2, 128>}]} {
    %c0 = arith.constant 0 : index
    %c0_0 = arith.constant 0 : index
    %0 = vector.load %arg1[%c0, %c0_0] : memref<2x128xf32, #tpu.memory_space<vmem>>, vector<2x128xf32>
    %cst = arith.constant 1.45519152E-11 : f32
    %1 = vector.broadcast %cst : f32 to vector<2x128xf32>
    %2 = arith.maximumf %0, %1 : vector<2x128xf32>
    %3 = arith.mulf %2, %2 : vector<2x128xf32>
    %cst_1 = arith.constant 1.45519152E-11 : f32
    %4 = vector.broadcast %cst_1 : f32 to vector<2x128xf32>
    %5 = arith.subf %3, %4 : vector<2x128xf32>
    %c0_2 = arith.constant 0 : index
    %c0_3 = arith.constant 0 : index
    %6 = vector.load %arg2[%c0_2, %c0_3] : memref<2x128xf32, #tpu.memory_space<vmem>>, vector<2x128xf32>
    tpu.vector_store %arg2[%c0_2, %c0_3], %5 {strides = array<i32>} : memref<2x128xf32, #tpu.memory_space<vmem>>, vector<2x128xf32>,
    return
  }
  func.func @transform_0(%arg0: i32) -> (i32, i32) {
    %c0_i32 = arith.constant 0 : i32
    %c0_i32_0 = arith.constant 0 : i32
    return %arg0, %c0_i32 : i32, i32
  }
  func.func @transform_1(%arg0: i32) -> (i32, i32) {
    %c0_i32 = arith.constant 0 : i32
    %c0_i32_0 = arith.constant 0 : i32
    return %arg0, %c0_i32 : i32, i32
  }
}

</mosaic_0001>

<bundles_post_ra>
// kernel: tpu_custom_call.1
= control target key start
LH: loop header
LB: loop body
LE: loop exit
PB: predicated region body
PF: predicated region fallthrough
CT: control target
= control target key end

     0   :  { %6 = vsyncpa [#allocation3], 0  ;;  %s118_s0 = inlined_call_operand.hbm [shape: f32[2,128], index: 0, kind: input, shape index: {}]   ;;  %s119_s1 = inlined_call_operand.hbm [shape: f32[2,128], index: 1, kind: output, shape index: {}]  }
   0x1   :  { %7 = vsyncpa [#allocation4], 0  ;;  %s13_s8 = sshll.u32 %s118_s0, 4  ;;  %s100_s9 = smov [#allocation2]   ;;  %s14_s8 = int_to_ptr.hbm [resolvable:$true] %s13_s8 }
   0x2   :  { %s15_s10 = sshll.u32 %s100_s9, 4  ;;  %s16_s10 = int_to_ptr.vmem [resolvable:$true] %s15_s10 }
   0x3   :  { %18 = dma.hbm_to_vmem [thread:$0]  %s14_s8, 32, %s16_s10, [#allocation3]  }
   0x4   :  { %96 = dma.done.wait [#allocation3], 32  }
   0x5   :  { %97 = vsyncadd [#allocation3], 4294967264  ;;  %v23_v0 = vld [vmem:[#allocation2] sm:$0x3]  ;;  %s101_s11 = smov [#allocation5]   ;;  %s35_s15 = sshll.u32 %s119_s1, 4  ;;  %s36_s15 = int_to_ptr.hbm [resolvable:$true] %s35_s15 }
   0x6   :  { %v24_v1 = vmax.f32 %v23_v0, 1.4551915e-11  ;;  %s33_s12 = sshll.u32 %s101_s11, 4  ;;  %s34_s12 = int_to_ptr.vmem [resolvable:$true] %s33_s12 }
   0x8   :  { %v25_v2 = vmul.f32 %v24_v1, %v24_v1 }
   0xa   :  { %v45_v3 = vadd.f32 -1.4551915e-11, %v25_v2 }
   0xc   :  { %27 = vst [vmem:[#allocation5] sm:$0x3] %v45_v3 }
   0xd   :  { %38 = dma.vmem_to_hbm [thread:$0]  %s34_s12, 32, %s36_s15, [#allocation4]  }
   0xe   :  { %98 = dma.done.wait [#allocation4], 32  }
   0xf   :  { %99 = vsyncadd [#allocation4], 4294967264 }
  0x10   :  { %43 = vsyncpa [#allocation3], 1 }
  0x11   :  { %44 = vsyncpa [#allocation4], 1 }

</bundles_post_ra>
